<compile_context>
chip_gen: v7x
topology: tpu7x:2x2x1
jax: 0.10.0
libtpu: 0.0.40
codegen_flags: <defaults>
</compile_context>

<pallas_src>
import functools

import jax
import jax.numpy as jnp
from jax.experimental import pallas as pl
from jax.experimental.pallas import tpu as pltpu


_CHUNK = 512  # lanes processed per inner-loop step (multiple of 128)


def _round_up(a, m):
    return ((a + m - 1) // m) * m


def _mlp_kernel(xT_ref, w1t_ref, b1_ref, w2_ref, b2_ref, o_ref, *, n_chunks, chunk):
    # xT_ref : (2, TN)  features on sublanes, batch on the 128-lane axis
    # w1t_ref: (H, 2)   fc1 weights, resident across grid steps
    # b1_ref : (H, 1)
    # w2_ref : (H, 1)
    # b2_ref : (1, 1)   scalar bias in SMEM
    # o_ref  : (1, TN)  lane-dense output slab
    # Load the resident single-vreg operands once; their lane-broadcast inside
    # the chunk loop is cheap VPU/XLU filler hidden under the EUP tanh.
    w1_0 = w1t_ref[:, 0:1]        # (H, 1)
    w1_1 = w1t_ref[:, 1:2]        # (H, 1)
    b1 = b1_ref[...]              # (H, 1)
    w2 = w2_ref[...]              # (H, 1)
    b2 = b2_ref[0, 0]             # scalar (SMEM)

    # Static-offset chunk loop over the lane (batch) axis: keeps intermediates
    # at (H, chunk) instead of (H, TN), avoiding VMEM spills at large TN.
    for c in range(n_chunks):
        off = c * chunk
        x0 = xT_ref[0:1, off:off + chunk]                  # (1, chunk)
        x1 = xT_ref[1:2, off:off + chunk]                  # (1, chunk)
        # fc1 + tanh: K=2 matmul would leave the MXU >98% idle, so use VPU
        # broadcast-FMAs; tanh runs on the EUP.
        h = jnp.tanh(w1_0 * x0 + w1_1 * x1 + b1)           # (H, chunk)
        # fc2: elementwise multiply + sublane (XLU) reduction -> lane-dense row.
        y = jnp.sum(h * w2, axis=0, keepdims=True) + b2    # (1, chunk)
        o_ref[0:1, off:off + chunk] = y.astype(o_ref.dtype)


def simple_nn_forward(x, w1, b1, w2, b2, *, tile_n=8192):
    """SimpleNN forward: tanh(x @ w1 + b1) @ w2 + b2.

    x: (N, 2); w1: (2, H); b1: (1, H) or (H,); w2: (H, 1); b2 scalar-like.
    Returns (N, 1) float32.
    """
    N = x.shape[0]
    H = w1.shape[1]

    # ---- batch-tile / chunk geometry --------------------------------------
    n_pad128 = _round_up(N, 128)
    if n_pad128 <= _CHUNK:
        tn = n_pad128          # single small tile; one chunk covers it
        chunk = tn
    else:
        # Large batch: tiles of up to tile_n lanes, multiple of _CHUNK, and at
        # most ~N/2 so there are always >= 2 grid tiles (v7x megacore split).
        tn = min(_round_up(tile_n, _CHUNK), _round_up(pl.cdiv(N, 2), _CHUNK))
        chunk = _CHUNK
    n_chunks = tn // chunk
    n_tiles = pl.cdiv(N, tn)

    # Lane-dense operand layouts (batch on the 128-lane axis).  Only a tiny
    # (N, 2) -> (2, N) transpose in the wrapper; no zero-padding pass — the
    # ragged last block is clipped by Pallas and its padded lanes discarded.
    xT = jnp.transpose(x).astype(jnp.float32)                 # (2, N)
    w1t = jnp.transpose(w1).astype(jnp.float32)               # (H, 2)
    b1c = jnp.reshape(b1, (H, 1)).astype(jnp.float32)         # (H, 1)
    w2c = jnp.reshape(w2, (H, 1)).astype(jnp.float32)         # (H, 1)
    b2c = jnp.reshape(b2, (1, 1)).astype(jnp.float32)         # scalar -> SMEM

    kernel = functools.partial(_mlp_kernel, n_chunks=n_chunks, chunk=chunk)

    yT = pl.pallas_call(
        kernel,
        out_shape=jax.ShapeDtypeStruct((1, N), jnp.float32),
        grid=(n_tiles,),
        in_specs=[
            pl.BlockSpec((2, tn), lambda i: (0, i)),             # pipelined x tile
            pl.BlockSpec((H, 2), lambda i: (0, 0)),              # resident weights
            pl.BlockSpec((H, 1), lambda i: (0, 0)),
            pl.BlockSpec((H, 1), lambda i: (0, 0)),
            pl.BlockSpec(memory_space=pltpu.MemorySpace.SMEM),   # scalar bias b2
        ],
        out_specs=pl.BlockSpec((1, tn), lambda i: (0, i)),
        compiler_params=pltpu.CompilerParams(
            dimension_semantics=("parallel",),  # shard batch tiles across TCs (v7x)
        ),
    )(xT, w1t, b1c, w2c, b2c)

    return jnp.reshape(yT, (N, 1))


if __name__ == "__main__":
    hidden_size = 32
    n_points = 100  # matches the spec's np.linspace(-3, 3, 100)

    key = jax.random.PRNGKey(0)
    k1, kb1, k2, kb2, kf = jax.random.split(key, 5)

    # PyTorch stores Linear weight as (out, in); we carry the transposed
    # (in, out) layout so the math is y = x @ W + b.
    w1 = jax.random.normal(k1, (2, hidden_size), dtype=jnp.float32) * 0.5
    b1 = jax.random.normal(kb1, (1, hidden_size), dtype=jnp.float32) * 0.1
    w2 = jax.random.normal(k2, (hidden_size, 1), dtype=jnp.float32) * 0.5
    b2 = jax.random.normal(kb2, (1, 1), dtype=jnp.float32) * 0.1

    def reference(xin):
        return jnp.tanh(xin @ w1 + b1) @ w2 + b2

    # Deployment-size input: (n_points, 2) — column 0 is the linspace grid
    # from the spec, column 1 a deterministic second feature.
    xs = jnp.linspace(-3.0, 3.0, n_points, dtype=jnp.float32)
    feat2 = jax.random.normal(kf, (n_points,), dtype=jnp.float32)
    x_small = jnp.stack([xs, feat2], axis=1)

    out_small = jax.block_until_ready(simple_nn_forward(x_small, w1, b1, w2, b2))
    assert out_small.shape == (n_points, 1)
    assert jnp.allclose(out_small, reference(x_small), atol=1e-5, rtol=1e-5)

    # Larger batch exercises the multi-tile grid, the inner chunk loop and the
    # ragged (clipped) last block.
    n_big = 3000
    x_big = jax.random.normal(jax.random.PRNGKey(1), (n_big, 2), dtype=jnp.float32)
    out_big = jax.block_until_ready(simple_nn_forward(x_big, w1, b1, w2, b2))
    assert out_big.shape == (n_big, 1)
    assert jnp.allclose(out_big, reference(x_big), atol=1e-5, rtol=1e-5)

    print("KERNEL_OK")
</pallas_src>

<mosaic_0001>
module attributes {stable_mosaic.version = 11 : i64} {
  func.func @_mlp_kernel(%arg0: i32, %arg1: memref<2x128xf32, #tpu.memory_space<vmem>>, %arg2: memref<32x2xf32, #tpu.memory_space<vmem>>, %arg3: memref<32x1xf32, #tpu.memory_space<vmem>>, %arg4: memref<32x1xf32, #tpu.memory_space<vmem>>, %arg5: memref<1x1xf32, #tpu.memory_space<smem>>, %arg6: memref<1x128xf32, #tpu.memory_space<vmem>>) attributes {dimension_semantics = [#tpu.dimension_semantics<parallel>], iteration_bounds = array<i64: 1>, scalar_prefetch = 0 : i64, scratch_operands = 0 : i64, tpu.core_type = #tpu.core_type<tc>, window_params = [{transform_indices = @transform_0, window_bounds = array<i64: 2, 128>}, {pipeline_mode = #tpu.pipeline_mode<synchronous>, transform_indices = @transform_1, window_bounds = array<i64: 32, 2>}, {pipeline_mode = #tpu.pipeline_mode<synchronous>, transform_indices = @transform_2, window_bounds = array<i64: 32, 1>}, {pipeline_mode = #tpu.pipeline_mode<synchronous>, transform_indices = @transform_3, window_bounds = array<i64: 32, 1>}, {transform_indices = @transform_4, window_bounds = array<i64: 1, 1>}, {transform_indices = @transform_5, window_bounds = array<i64: 1, 128>}]} {
    %c0 = arith.constant 0 : index
    %c0_0 = arith.constant 0 : index
    %0 = vector.load %arg2[%c0, %c0_0] : memref<32x2xf32, #tpu.memory_space<vmem>>, vector<32x1xf32>
    %c0_1 = arith.constant 0 : index
    %c1 = arith.constant 1 : index
    %1 = vector.load %arg2[%c0_1, %c1] : memref<32x2xf32, #tpu.memory_space<vmem>>, vector<32x1xf32>
    %c0_2 = arith.constant 0 : index
    %c0_3 = arith.constant 0 : index
    %2 = vector.load %arg3[%c0_2, %c0_3] : memref<32x1xf32, #tpu.memory_space<vmem>>, vector<32x1xf32>
    %c0_4 = arith.constant 0 : index
    %c0_5 = arith.constant 0 : index
    %3 = vector.load %arg4[%c0_4, %c0_5] : memref<32x1xf32, #tpu.memory_space<vmem>>, vector<32x1xf32>
    %c0_6 = arith.constant 0 : index
    %c0_7 = arith.constant 0 : index
    %4 = memref.load %arg5[%c0_6, %c0_7] : memref<1x1xf32, #tpu.memory_space<smem>>
    %c0_8 = arith.constant 0 : index
    %c0_9 = arith.constant 0 : index
    %5 = vector.load %arg1[%c0_8, %c0_9] : memref<2x128xf32, #tpu.memory_space<vmem>>, vector<1x128xf32>
    %c1_10 = arith.constant 1 : index
    %c0_11 = arith.constant 0 : index
    %6 = vector.load %arg1[%c1_10, %c0_11] : memref<2x128xf32, #tpu.memory_space<vmem>>, vector<1x128xf32>
    %7 = vector.broadcast %0 : vector<32x1xf32> to vector<32x128xf32>
    %8 = vector.broadcast %5 : vector<1x128xf32> to vector<32x128xf32>
    %9 = arith.mulf %7, %8 : vector<32x128xf32>
    %10 = vector.broadcast %1 : vector<32x1xf32> to vector<32x128xf32>
    %11 = vector.broadcast %6 : vector<1x128xf32> to vector<32x128xf32>
    %12 = arith.mulf %10, %11 : vector<32x128xf32>
    %13 = arith.addf %9, %12 : vector<32x128xf32>
    %14 = vector.broadcast %2 : vector<32x1xf32> to vector<32x128xf32>
    %15 = arith.addf %13, %14 : vector<32x128xf32>
    %16 = math.tanh %15 : vector<32x128xf32>
    %17 = vector.broadcast %3 : vector<32x1xf32> to vector<32x128xf32>
    %18 = arith.mulf %16, %17 : vector<32x128xf32>
    %cst = arith.constant dense<0.000000e+00> : vector<128xf32>
    %19 = vector.multi_reduction <add>, %18, %cst [0] : vector<32x128xf32> to vector<128xf32>
    %20 = vector.shape_cast %19 : vector<128xf32> to vector<1x128xf32>
    %21 = vector.broadcast %4 : f32 to vector<1x128xf32>
    %22 = arith.addf %20, %21 : vector<1x128xf32>
    %c0_12 = arith.constant 0 : index
    %c0_13 = arith.constant 0 : index
    %23 = vector.load %arg6[%c0_12, %c0_13] : memref<1x128xf32, #tpu.memory_space<vmem>>, vector<1x128xf32>
    tpu.vector_store %arg6[%c0_12, %c0_13], %22 {strides = array<i32>} : memref<1x128xf32, #tpu.memory_space<vmem>>, vector<1x128xf32>,
    return
  }
  func.func @transform_0(%arg0: i32) -> (i32, i32) {
    %c0_i32 = arith.constant 0 : i32
    %c0_i32_0 = arith.constant 0 : i32
    return %c0_i32, %arg0 : i32, i32
  }
  func.func @transform_1(%arg0: i32) -> (i32, i32) {
    %c0_i32 = arith.constant 0 : i32
    %c0_i32_0 = arith.constant 0 : i32
    %c0_i32_1 = arith.constant 0 : i32
    return %c0_i32, %c0_i32_0 : i32, i32
  }
  func.func @transform_2(%arg0: i32) -> (i32, i32) {
    %c0_i32 = arith.constant 0 : i32
    %c0_i32_0 = arith.constant 0 : i32
    %c0_i32_1 = arith.constant 0 : i32
    return %c0_i32, %c0_i32_0 : i32, i32
  }
  func.func @transform_3(%arg0: i32) -> (i32, i32) {
    %c0_i32 = arith.constant 0 : i32
    %c0_i32_0 = arith.constant 0 : i32
    %c0_i32_1 = arith.constant 0 : i32
    return %c0_i32, %c0_i32_0 : i32, i32
  }
  func.func @transform_4(%arg0: i32) -> (i32, i32) {
    %c0_i32 = arith.constant 0 : i32
    %c0_i32_0 = arith.constant 0 : i32
    %c0_i32_1 = arith.constant 0 : i32
    return %c0_i32, %c0_i32_0 : i32, i32
  }
  func.func @transform_5(%arg0: i32) -> (i32, i32) {
    %c0_i32 = arith.constant 0 : i32
    %c0_i32_0 = arith.constant 0 : i32
    return %c0_i32, %arg0 : i32, i32
  }
}

</mosaic_0001>

<bundles_post_ra>
// kernel: tpu_custom_call.1
= control target key start
LH: loop header
LB: loop body
LE: loop exit
PB: predicated region body
PF: predicated region fallthrough
CT: control target
= control target key end

     0   :  { %v211_v1 = vmov 1   ;;  %v212_v2 = vmov 0   ;;  %s301_s0 = inlined_call_operand.vmem [shape: f32[2,100], index: 0, kind: input, shape index: {}]   ;;  %s302_s1 = inlined_call_operand.vmem [shape: f32[32,2], index: 1, kind: input, shape index: {}]   ;;  %s303_s2 = inlined_call_operand.vmem [shape: f32[32,1], index: 2, kind: input, shape index: {}]   ;;  %s304_s3 = inlined_call_operand.vmem [shape: f32[32,1], index: 3, kind: input, shape index: {}]   ;;  %s305_s4 = inlined_call_operand.<no memory space> [shape: f32[1,1], index: 4, kind: input, shape index: {}]   ;;  %s306_s5 = inlined_call_operand.hbm [shape: f32[1,100], index: 5, kind: output, shape index: {}]  }
   0x1   :  { %v22_v0 = vld [vmem:[%s302_s1] sm:$0xff]  ;;  %177 = vset.pattern.permute.xlu1 %v211_v1  ;;  %176 = vset.pattern.permute.xlu0 %v212_v2  ;;  %v23_v3 = vld [vmem:[%s302_s1 + $0x8] sm:$0xff] }
   0x2   :  { %66 = vperm.xlu1 %177, %v22_v0   ;;  %39 = vperm.xlu0 %176, %v22_v0  }
   0x3   :  { %11 = vsyncpa [#allocation4], 0  ;;  %v24_v4 = vld [vmem:[%s302_s1 + $0x10] sm:$0xff]  ;;  %v25_v5 = vld [vmem:[%s302_s1 + $0x18] sm:$0xff]  ;;  %v154_v0 = vstv %s305_s4  ;;  %s213_s19 = smov [#allocation3]  }
   0x4   :  { %v26_v6 = vld [vmem:[%s303_s2] sm:$0xff]  ;;  %v27_v7 = vld [vmem:[%s303_s2 + $0x8] sm:$0xff]  ;;  %v28_v8 = vld [vmem:[%s303_s2 + $0x10] sm:$0xff]  ;;  %s163_s20 = sshll.u32 %s213_s19, 4  ;;  %s164_s20 = int_to_ptr.vmem [resolvable:$true] %s163_s20 }
   0x5   :  { %v29_v9 = vld [vmem:[%s303_s2 + $0x18] sm:$0xff]  ;;  %v30_v10 = vld [vmem:[%s304_s3] sm:$0xff]  ;;  %v31_v11 = vld [vmem:[%s304_s3 + $0x8] sm:$0xff]  ;;  %s187_s21 = scalar_lea.vmem %s164_s20, 16  ;;  %s191_s22 = scalar_lea.vmem %s164_s20, 32 }
   0x6   :  { %70 = vperm.xlu1 %177, %v23_v3   ;;  %44 = vperm.xlu0 %176, %v23_v3   ;;  %v32_v12 = vld [vmem:[%s304_s3 + $0x10] sm:$0xff]  ;;  %v33_v13 = vld [vmem:[%s304_s3 + $0x18] sm:$0xff]  ;;  %v172_v18 = vld [vmem:[%s301_s0 + $0x1] ss:$0 sm:$0xff]  ;;  %p188_p0 = scmp.ne.s32.totalorder %s164_s20, %s187_s21  ;;  %p192_p1 = scmp.lt.s32.totalorder %s164_s20, %s164_s20 }
   0x7   :  { %v171_v19 = vld [vmem:[%s301_s0] ss:$0 sm:$0xff]  ;;  %p193_p2 = scmp.lt.s32.totalorder %s191_s22, %s187_s21 }
   0x9   :  { %p194_p3 = por %p193_p2, %p192_p1 }
   0xa   :  { %74 = vperm.xlu1 %177, %v24_v4   ;;  %49 = vperm.xlu0 %176, %v24_v4  }
   0xb   :  { %p195_p4 = pnand %p194_p3, %p188_p0 }
   0xe   :  { %78 = vperm.xlu1 %177, %v25_v5   ;;  %54 = vperm.xlu0 %176, %v25_v5  }
  0x12   :  { %178 = vset.pattern.permute.xlu1 %v212_v2  ;;  %95 = vperm.xlu0 %176, %v26_v6  }
  0x13   :  { %100 = vperm.xlu1 %178, %v27_v7  }
  0x16   :  { %105 = vperm.xlu0 %176, %v28_v8  }
  0x17   :  { %110 = vperm.xlu1 %178, %v29_v9  }
  0x1a   :  { %123 = vperm.xlu0 %176, %v30_v10  }
  0x1b   :  { %128 = vperm.xlu1 %178, %v31_v11  }
  0x1e   :  { %133 = vperm.xlu0 %176, %v32_v12  }
  0x1f   :  { %138 = vperm.xlu1 %178, %v33_v13  }
  0x81   :  { %v67_v14 = vpop.permute.xlu1 %66  ;;  %v40_v15 = vpop.permute.xlu0 %39 }
  0x82   :  { %v85_v22 = vmul.f32 %v172_v18, %v67_v14  ;;  %v61_v23 = vmul.f32 %v171_v19, %v40_v15 }
  0x84   :  { %v89_v30 = vadd.f32 %v85_v22, %v61_v23 }
  0x85   :  { %v71_v16 = vpop.permute.xlu1 %70  ;;  %v45_v17 = vpop.permute.xlu0 %44 }
  0x86   :  { %v86_v24 = vmul.f32 %v172_v18, %v71_v16  ;;  %v62_v25 = vmul.f32 %v171_v19, %v45_v17 }
  0x88   :  { %v90_v34 = vadd.f32 %v86_v24, %v62_v25 }
  0x89   :  { %v75_v20 = vpop.permute.xlu1 %74  ;;  %v50_v21 = vpop.permute.xlu0 %49 }
  0x8a   :  { %v87_v28 = vmul.f32 %v172_v18, %v75_v20  ;;  %v63_v29 = vmul.f32 %v171_v19, %v50_v21 }
  0x8c   :  { %v91_v38 = vadd.f32 %v87_v28, %v63_v29 }
  0x8d   :  { %v79_v26 = vpop.permute.xlu1 %78  ;;  %v55_v27 = vpop.permute.xlu0 %54 }
  0x8e   :  { %v88_v31 = vmul.f32 %v172_v18, %v79_v26  ;;  %v64_v32 = vmul.f32 %v171_v19, %v55_v27 }
  0x90   :  { %v92_v40 = vadd.f32 %v88_v31, %v64_v32 }
  0x91   :  { %v96_v33 = vpop.permute.xlu0 %95 }
  0x92   :  { %v113_v35 = vadd.f32 %v96_v33, %v89_v30  ;;  %v101_v36 = vpop.permute.xlu1 %100 }
  0x93   :  { %v114_v37 = vadd.f32 %v101_v36, %v90_v34 }
  0x94   :  { %179 = vtanh.f32 %v113_v35 }
  0x95   :  { %181 = vtanh.f32 %v114_v37  ;;  %v106_v39 = vpop.permute.xlu0 %105 }
  0x96   :  { %v115_v41 = vadd.f32 %v106_v39, %v91_v38  ;;  %v111_v42 = vpop.permute.xlu1 %110 }
  0x97   :  { %v116_v43 = vadd.f32 %v111_v42, %v92_v40 }
  0x98   :  { %183 = vtanh.f32 %v115_v41 }
  0x99   :  { %185 = vtanh.f32 %v116_v43  ;;  %v124_v44 = vpop.permute.xlu0 %123 }
  0x9a   :  { %v129_v45 = vpop.permute.xlu1 %128 }
  0x9d   :  { %v134_v52 = vpop.permute.xlu0 %133 }
  0x9e   :  { %v180_v46 = vpop.eup %179  ;;  %v139_v55 = vpop.permute.xlu1 %138 }
  0x9f   :  { %v182_v47 = vpop.eup %181  ;;  %v141_v48 = vmul.f32 %v180_v46, %v124_v44 }
  0xa0   :  { %v142_v49 = vmul.f32 %v182_v47, %v129_v45 }
  0xa2   :  { %v184_v50 = vpop.eup %183  ;;  %v145_v51 = vadd.f32 %v142_v49, %v141_v48 }
  0xa3   :  { %v186_v53 = vpop.eup %185  ;;  %v143_v54 = vmul.f32 %v184_v50, %v134_v52 }
  0xa4   :  { %v144_v56 = vmul.f32 %v186_v53, %v139_v55 }
  0xa5   :  { %v146_v57 = vadd.f32 %v145_v51, %v143_v54 }
  0xa7   :  { %v147_v58 = vadd.f32 %v146_v57, %v144_v56 }
  0xa9   :  { %v148_v59 = vrot.slane %v147_v58, 4 }
  0xab   :  { %v149_v60 = vadd.f32 %v148_v59, %v147_v58 }
  0xad   :  { %v150_v61 = vrot.slane %v149_v60, 2 }
  0xaf   :  { %v151_v62 = vadd.f32 %v150_v61, %v149_v60 }
  0xb1   :  { %v152_v63 = vrot.slane %v151_v62, 1 }
  0xb3   :  { %v153_v1 = vadd.f32 %v152_v63, %v151_v62 }
  0xb5   :  { %v155_v2 = vadd.f32 %v154_v0, %v153_v1 }
  0xb7   :  { %156 = vst [vmem:[#allocation3] sm:$0x1] %v155_v2 }
  0xb8   :  { %198 = shalt.err (!%p195_p4)
}
  0xb9   :  { %s199_s25 = scalar_lea.hbm %s306_s5, 16 }
  0xba   :  { %p200_p5 = scmp.ne.s32.totalorder %s306_s5, %s199_s25  ;;  %p203_p6 = scmp.lt.u32.totalorder %s199_s25, %s306_s5 }
  0xbc   :  { %p205_p7 = pnand %p203_p6, %p200_p5 }
  0xbe   :  { %208 = shalt.err (!%p205_p7)
}
  0xbf   :  { %166 = dma.vmem_to_hbm [thread:$0]  %s164_s20, 16, %s306_s5, [#allocation4]  }
  0xc0   :  { %209 = dma.done.wait [#allocation4], 16  }
  0xc1   :  { %210 = vsyncadd [#allocation4], 4294967280 }
  0xc2   :  { %170 = vsyncpa [#allocation4], 1 }

</bundles_post_ra>
